<compile_context>
chip_gen: v7x
topology: tpu7x:2x2x1
jax: 0.10.0
libtpu: 0.0.40
codegen_flags: <defaults>
</compile_context>

<pallas_src>
import jax
import jax.numpy as jnp
from jax.experimental import pallas as pl
from jax.experimental.pallas import tpu as pltpu


def _txa_filter_kernel(x_ref, ws_ref, wc_ref, p_ref, o_ref):
    """One batch element of the filter ensemble.

    x_ref : (T,  CC)  input, components interleaved on lanes (lane = 2c + i)
    ws_ref: (K,  CC)  same-component taps   w_same[k, 2c+o]  = W[c, o,   o, k]
    wc_ref: (K,  CC)  cross-component taps  w_cross[k, 2c+i] = W[c, 1-i, i, k]
    p_ref : (CC, CC)  pair-swap permutation (lane 2c+i -> lane 2c+(1-i))
    o_ref : (OUT, CC) valid sliding-correlation output (lane = 2c + o)
    """
    out_len = o_ref.shape[0]
    k_len = ws_ref.shape[0]

    x = x_ref[...]     # (T, CC)
    ws = ws_ref[...]   # (K, CC)
    wc = wc_ref[...]   # (K, CC)

    acc_s = jnp.zeros(o_ref.shape, jnp.float32)   # same-component, output-lane order
    acc_c = jnp.zeros(o_ref.shape, jnp.float32)   # cross-component, input-lane order

    # Static unrolled tap loop: each tap is a sublane-axis window shift times a
    # per-lane weight row -- pure VPU work, no cross-lane data movement.
    for k in range(k_len):
        win = x[k:k + out_len, :]                 # (OUT, CC)
        acc_s = acc_s + win * ws[k:k + 1, :]
        acc_c = acc_c + win * wc[k:k + 1, :]

    # Single cross-lane move per tile: pair-swap the cross accumulator on the MXU.
    o_ref[...] = acc_s + jnp.dot(acc_c, p_ref[...],
                                 preferred_element_type=jnp.float32)


def txa_filter_ensemble(x, w, out_seq_size):
    """TxaFilterEnsemble forward.

    x: (B, T, C, 2) float.  w: (C, 2, 2, K) per-channel Conv1d weights [o, i, k].
    Returns (B, out_seq_size, C, 2) float32.
    """
    B, T, C, two = x.shape
    assert two == 2
    K = T - out_seq_size + 1
    assert w.shape == (C, 2, 2, K)
    CC = 2 * C

    # Lane-dense layout (free reshape): lane index = 2*c + component.
    xk = x.astype(jnp.float32).reshape(B, T, CC)

    wf = w.astype(jnp.float32)
    # w_same[k, 2c+o]  = W[c, o,   o, k]   (input component == output component)
    w_same = jnp.stack([wf[:, 0, 0, :], wf[:, 1, 1, :]], axis=-1)    # (C, K, 2)
    # w_cross[k, 2c+i] = W[c, 1-i, i, k]   (indexed by INPUT component i)
    w_cross = jnp.stack([wf[:, 1, 0, :], wf[:, 0, 1, :]], axis=-1)   # (C, K, 2)
    w_same = jnp.transpose(w_same, (1, 0, 2)).reshape(K, CC)
    w_cross = jnp.transpose(w_cross, (1, 0, 2)).reshape(K, CC)

    # Pair-swap permutation matrix: swapped = acc @ P moves lane 2c+i -> 2c+(1-i).
    perm = jnp.kron(jnp.eye(C, dtype=jnp.float32),
                    jnp.array([[0.0, 1.0], [1.0, 0.0]], jnp.float32))   # (CC, CC)

    out = pl.pallas_call(
        _txa_filter_kernel,
        out_shape=jax.ShapeDtypeStruct((B, out_seq_size, CC), jnp.float32),
        grid_spec=pltpu.PrefetchScalarGridSpec(
            num_scalar_prefetch=0,
            grid=(B,),
            in_specs=[
                pl.BlockSpec((None, T, CC), lambda b: (b, 0, 0)),   # squeezed batch
                pl.BlockSpec((K, CC), lambda b: (0, 0)),            # resident weights
                pl.BlockSpec((K, CC), lambda b: (0, 0)),
                pl.BlockSpec((CC, CC), lambda b: (0, 0)),
            ],
            out_specs=pl.BlockSpec((None, out_seq_size, CC), lambda b: (b, 0, 0)),
        ),
        compiler_params=pltpu.CompilerParams(
            dimension_semantics=("parallel",),
        ),
    )(xk, w_same, w_cross, perm)

    # Free reshape back to the PyTorch layout.
    return out.reshape(B, out_seq_size, C, 2)


def _reference(x, w, out_seq_size):
    """Pure-JAX replica of the PyTorch module (groups=1 Conv1d cross-correlation,
    2 input components mixed into 2 output components per txa channel)."""
    K = w.shape[-1]
    idx = jnp.arange(out_seq_size)[:, None] + jnp.arange(K)[None, :]   # (OUT, K)
    win = x[:, idx, :, :]                                              # (B, OUT, K, C, 2)
    return jnp.einsum('btkci,coik->btco',
                      win.astype(jnp.float32), w.astype(jnp.float32))


if __name__ == "__main__":
    # Small shapes consistent with the module: batch=2, channels=4,
    # in_seq_size=16, out_seq_size=8 -> K = 9 filter taps.
    B, C = 2, 4
    in_seq_size, out_seq_size = 16, 8
    K = in_seq_size - out_seq_size + 1

    key = jax.random.PRNGKey(0)
    kx, kw = jax.random.split(key)

    x = jax.random.normal(kx, (B, in_seq_size, C, 2), dtype=jnp.float32)
    # Deterministic stand-in for nn.Conv1d(2, 2, K, bias=False) default init:
    # uniform(-sqrt(1/(2K)), sqrt(1/(2K))), one (2, 2, K) filter per channel.
    bound = 1.0 / jnp.sqrt(jnp.float32(2 * K))
    w = jax.random.uniform(kw, (C, 2, 2, K), jnp.float32, -bound, bound)

    out = jax.block_until_ready(txa_filter_ensemble(x, w, out_seq_size))
    ref = _reference(x, w, out_seq_size)

    assert out.shape == (B, out_seq_size, C, 2)
    assert jnp.allclose(out, ref, atol=1e-5, rtol=1e-5)

    print("KERNEL_OK")
</pallas_src>

<mosaic_0001>
module attributes {stable_mosaic.version = 11 : i64} {
  func.func @_txa_filter_kernel(%arg0: i32, %arg1: memref<1x16x8xf32, #tpu.memory_space<vmem>>, %arg2: memref<9x8xf32, #tpu.memory_space<vmem>>, %arg3: memref<9x8xf32, #tpu.memory_space<vmem>>, %arg4: memref<8x8xf32, #tpu.memory_space<vmem>>, %arg5: memref<1x8x8xf32, #tpu.memory_space<vmem>>) attributes {dimension_semantics = [#tpu.dimension_semantics<parallel>], iteration_bounds = array<i64: 2>, scalar_prefetch = 0 : i64, scratch_operands = 0 : i64, tpu.core_type = #tpu.core_type<tc>, window_params = [{transform_indices = @transform_0, window_bounds = array<i64: 1, 16, 8>}, {pipeline_mode = #tpu.pipeline_mode<synchronous>, transform_indices = @transform_1, window_bounds = array<i64: 9, 8>}, {pipeline_mode = #tpu.pipeline_mode<synchronous>, transform_indices = @transform_2, window_bounds = array<i64: 9, 8>}, {pipeline_mode = #tpu.pipeline_mode<synchronous>, transform_indices = @transform_3, window_bounds = array<i64: 8, 8>}, {transform_indices = @transform_4, window_bounds = array<i64: 1, 8, 8>}]} {
    %c0 = arith.constant 0 : index
    %c0_0 = arith.constant 0 : index
    %c0_1 = arith.constant 0 : index
    %0 = vector.load %arg1[%c0, %c0_0, %c0_1] : memref<1x16x8xf32, #tpu.memory_space<vmem>>, vector<1x16x8xf32>
    %1 = vector.shape_cast %0 : vector<1x16x8xf32> to vector<16x8xf32>
    %c0_2 = arith.constant 0 : index
    %c0_3 = arith.constant 0 : index
    %2 = vector.load %arg2[%c0_2, %c0_3] : memref<9x8xf32, #tpu.memory_space<vmem>>, vector<9x8xf32>
    %c0_4 = arith.constant 0 : index
    %c0_5 = arith.constant 0 : index
    %3 = vector.load %arg3[%c0_4, %c0_5] : memref<9x8xf32, #tpu.memory_space<vmem>>, vector<9x8xf32>
    %cst = arith.constant 0.000000e+00 : f32
    %4 = vector.broadcast %cst : f32 to vector<8x8xf32>
    %cst_6 = arith.constant 0.000000e+00 : f32
    %5 = vector.broadcast %cst_6 : f32 to vector<8x8xf32>
    %6 = vector.extract_strided_slice %1 {offsets = [0, 0], sizes = [8, 8], strides = [1, 1]} : vector<16x8xf32> to vector<8x8xf32>
    %7 = vector.extract_strided_slice %2 {offsets = [0, 0], sizes = [1, 8], strides = [1, 1]} : vector<9x8xf32> to vector<1x8xf32>
    %8 = vector.broadcast %7 : vector<1x8xf32> to vector<8x8xf32>
    %9 = arith.mulf %6, %8 : vector<8x8xf32>
    %10 = arith.addf %4, %9 : vector<8x8xf32>
    %11 = vector.extract_strided_slice %3 {offsets = [0, 0], sizes = [1, 8], strides = [1, 1]} : vector<9x8xf32> to vector<1x8xf32>
    %12 = vector.broadcast %11 : vector<1x8xf32> to vector<8x8xf32>
    %13 = arith.mulf %6, %12 : vector<8x8xf32>
    %14 = arith.addf %5, %13 : vector<8x8xf32>
    %15 = vector.extract_strided_slice %1 {offsets = [1, 0], sizes = [8, 8], strides = [1, 1]} : vector<16x8xf32> to vector<8x8xf32>
    %16 = vector.extract_strided_slice %2 {offsets = [1, 0], sizes = [1, 8], strides = [1, 1]} : vector<9x8xf32> to vector<1x8xf32>
    %17 = vector.broadcast %16 : vector<1x8xf32> to vector<8x8xf32>
    %18 = arith.mulf %15, %17 : vector<8x8xf32>
    %19 = arith.addf %10, %18 : vector<8x8xf32>
    %20 = vector.extract_strided_slice %3 {offsets = [1, 0], sizes = [1, 8], strides = [1, 1]} : vector<9x8xf32> to vector<1x8xf32>
    %21 = vector.broadcast %20 : vector<1x8xf32> to vector<8x8xf32>
    %22 = arith.mulf %15, %21 : vector<8x8xf32>
    %23 = arith.addf %14, %22 : vector<8x8xf32>
    %24 = vector.extract_strided_slice %1 {offsets = [2, 0], sizes = [8, 8], strides = [1, 1]} : vector<16x8xf32> to vector<8x8xf32>
    %25 = vector.extract_strided_slice %2 {offsets = [2, 0], sizes = [1, 8], strides = [1, 1]} : vector<9x8xf32> to vector<1x8xf32>
    %26 = vector.broadcast %25 : vector<1x8xf32> to vector<8x8xf32>
    %27 = arith.mulf %24, %26 : vector<8x8xf32>
    %28 = arith.addf %19, %27 : vector<8x8xf32>
    %29 = vector.extract_strided_slice %3 {offsets = [2, 0], sizes = [1, 8], strides = [1, 1]} : vector<9x8xf32> to vector<1x8xf32>
    %30 = vector.broadcast %29 : vector<1x8xf32> to vector<8x8xf32>
    %31 = arith.mulf %24, %30 : vector<8x8xf32>
    %32 = arith.addf %23, %31 : vector<8x8xf32>
    %33 = vector.extract_strided_slice %1 {offsets = [3, 0], sizes = [8, 8], strides = [1, 1]} : vector<16x8xf32> to vector<8x8xf32>
    %34 = vector.extract_strided_slice %2 {offsets = [3, 0], sizes = [1, 8], strides = [1, 1]} : vector<9x8xf32> to vector<1x8xf32>
    %35 = vector.broadcast %34 : vector<1x8xf32> to vector<8x8xf32>
    %36 = arith.mulf %33, %35 : vector<8x8xf32>
    %37 = arith.addf %28, %36 : vector<8x8xf32>
    %38 = vector.extract_strided_slice %3 {offsets = [3, 0], sizes = [1, 8], strides = [1, 1]} : vector<9x8xf32> to vector<1x8xf32>
    %39 = vector.broadcast %38 : vector<1x8xf32> to vector<8x8xf32>
    %40 = arith.mulf %33, %39 : vector<8x8xf32>
    %41 = arith.addf %32, %40 : vector<8x8xf32>
    %42 = vector.extract_strided_slice %1 {offsets = [4, 0], sizes = [8, 8], strides = [1, 1]} : vector<16x8xf32> to vector<8x8xf32>
    %43 = vector.extract_strided_slice %2 {offsets = [4, 0], sizes = [1, 8], strides = [1, 1]} : vector<9x8xf32> to vector<1x8xf32>
    %44 = vector.broadcast %43 : vector<1x8xf32> to vector<8x8xf32>
    %45 = arith.mulf %42, %44 : vector<8x8xf32>
    %46 = arith.addf %37, %45 : vector<8x8xf32>
    %47 = vector.extract_strided_slice %3 {offsets = [4, 0], sizes = [1, 8], strides = [1, 1]} : vector<9x8xf32> to vector<1x8xf32>
    %48 = vector.broadcast %47 : vector<1x8xf32> to vector<8x8xf32>
    %49 = arith.mulf %42, %48 : vector<8x8xf32>
    %50 = arith.addf %41, %49 : vector<8x8xf32>
    %51 = vector.extract_strided_slice %1 {offsets = [5, 0], sizes = [8, 8], strides = [1, 1]} : vector<16x8xf32> to vector<8x8xf32>
    %52 = vector.extract_strided_slice %2 {offsets = [5, 0], sizes = [1, 8], strides = [1, 1]} : vector<9x8xf32> to vector<1x8xf32>
    %53 = vector.broadcast %52 : vector<1x8xf32> to vector<8x8xf32>
    %54 = arith.mulf %51, %53 : vector<8x8xf32>
    %55 = arith.addf %46, %54 : vector<8x8xf32>
    %56 = vector.extract_strided_slice %3 {offsets = [5, 0], sizes = [1, 8], strides = [1, 1]} : vector<9x8xf32> to vector<1x8xf32>
    %57 = vector.broadcast %56 : vector<1x8xf32> to vector<8x8xf32>
    %58 = arith.mulf %51, %57 : vector<8x8xf32>
    %59 = arith.addf %50, %58 : vector<8x8xf32>
    %60 = vector.extract_strided_slice %1 {offsets = [6, 0], sizes = [8, 8], strides = [1, 1]} : vector<16x8xf32> to vector<8x8xf32>
    %61 = vector.extract_strided_slice %2 {offsets = [6, 0], sizes = [1, 8], strides = [1, 1]} : vector<9x8xf32> to vector<1x8xf32>
    %62 = vector.broadcast %61 : vector<1x8xf32> to vector<8x8xf32>
    %63 = arith.mulf %60, %62 : vector<8x8xf32>
    %64 = arith.addf %55, %63 : vector<8x8xf32>
    %65 = vector.extract_strided_slice %3 {offsets = [6, 0], sizes = [1, 8], strides = [1, 1]} : vector<9x8xf32> to vector<1x8xf32>
    %66 = vector.broadcast %65 : vector<1x8xf32> to vector<8x8xf32>
    %67 = arith.mulf %60, %66 : vector<8x8xf32>
    %68 = arith.addf %59, %67 : vector<8x8xf32>
    %69 = vector.extract_strided_slice %1 {offsets = [7, 0], sizes = [8, 8], strides = [1, 1]} : vector<16x8xf32> to vector<8x8xf32>
    %70 = vector.extract_strided_slice %2 {offsets = [7, 0], sizes = [1, 8], strides = [1, 1]} : vector<9x8xf32> to vector<1x8xf32>
    %71 = vector.broadcast %70 : vector<1x8xf32> to vector<8x8xf32>
    %72 = arith.mulf %69, %71 : vector<8x8xf32>
    %73 = arith.addf %64, %72 : vector<8x8xf32>
    %74 = vector.extract_strided_slice %3 {offsets = [7, 0], sizes = [1, 8], strides = [1, 1]} : vector<9x8xf32> to vector<1x8xf32>
    %75 = vector.broadcast %74 : vector<1x8xf32> to vector<8x8xf32>
    %76 = arith.mulf %69, %75 : vector<8x8xf32>
    %77 = arith.addf %68, %76 : vector<8x8xf32>
    %78 = vector.extract_strided_slice %1 {offsets = [8, 0], sizes = [8, 8], strides = [1, 1]} : vector<16x8xf32> to vector<8x8xf32>
    %79 = vector.extract_strided_slice %2 {offsets = [8, 0], sizes = [1, 8], strides = [1, 1]} : vector<9x8xf32> to vector<1x8xf32>
    %80 = vector.broadcast %79 : vector<1x8xf32> to vector<8x8xf32>
    %81 = arith.mulf %78, %80 : vector<8x8xf32>
    %82 = arith.addf %73, %81 : vector<8x8xf32>
    %83 = vector.extract_strided_slice %3 {offsets = [8, 0], sizes = [1, 8], strides = [1, 1]} : vector<9x8xf32> to vector<1x8xf32>
    %84 = vector.broadcast %83 : vector<1x8xf32> to vector<8x8xf32>
    %85 = arith.mulf %78, %84 : vector<8x8xf32>
    %86 = arith.addf %77, %85 : vector<8x8xf32>
    %c0_7 = arith.constant 0 : index
    %c0_8 = arith.constant 0 : index
    %87 = vector.load %arg4[%c0_7, %c0_8] : memref<8x8xf32, #tpu.memory_space<vmem>>, vector<8x8xf32>
    %cst_9 = arith.constant dense<0.000000e+00> : vector<8x8xf32>
    %88 = tpu.matmul %86, %87, %cst_9 {dimension_numbers = #tpu.dot_dimension_numbers<[1], [0], [0], [1], [0, 0, 1, 1], [], []>} : vector<8x8xf32>, vector<8x8xf32>, vector<8x8xf32> -> vector<8x8xf32>
    %89 = arith.addf %82, %88 : vector<8x8xf32>
    %c0_10 = arith.constant 0 : index
    %c0_11 = arith.constant 0 : index
    %c0_12 = arith.constant 0 : index
    %90 = vector.load %arg5[%c0_10, %c0_11, %c0_12] : memref<1x8x8xf32, #tpu.memory_space<vmem>>, vector<1x8x8xf32>
    %91 = vector.shape_cast %90 : vector<1x8x8xf32> to vector<8x8xf32>
    %92 = vector.shape_cast %89 : vector<8x8xf32> to vector<1x8x8xf32>
    tpu.vector_store %arg5[%c0_10, %c0_11, %c0_12], %92 {strides = array<i32>} : memref<1x8x8xf32, #tpu.memory_space<vmem>>, vector<1x8x8xf32>,
    return
  }
  func.func @transform_0(%arg0: i32) -> (i32, i32, i32) {
    %c0_i32 = arith.constant 0 : i32
    %c0_i32_0 = arith.constant 0 : i32
    %c0_i32_1 = arith.constant 0 : i32
    return %arg0, %c0_i32, %c0_i32_0 : i32, i32, i32
  }
  func.func @transform_1(%arg0: i32) -> (i32, i32) {
    %c0_i32 = arith.constant 0 : i32
    %c0_i32_0 = arith.constant 0 : i32
    %c0_i32_1 = arith.constant 0 : i32
    return %c0_i32, %c0_i32_0 : i32, i32
  }
  func.func @transform_2(%arg0: i32) -> (i32, i32) {
    %c0_i32 = arith.constant 0 : i32
    %c0_i32_0 = arith.constant 0 : i32
    %c0_i32_1 = arith.constant 0 : i32
    return %c0_i32, %c0_i32_0 : i32, i32
  }
  func.func @transform_3(%arg0: i32) -> (i32, i32) {
    %c0_i32 = arith.constant 0 : i32
    %c0_i32_0 = arith.constant 0 : i32
    %c0_i32_1 = arith.constant 0 : i32
    return %c0_i32, %c0_i32_0 : i32, i32
  }
  func.func @transform_4(%arg0: i32) -> (i32, i32, i32) {
    %c0_i32 = arith.constant 0 : i32
    %c0_i32_0 = arith.constant 0 : i32
    %c0_i32_1 = arith.constant 0 : i32
    return %arg0, %c0_i32, %c0_i32_0 : i32, i32, i32
  }
}

</mosaic_0001>

<bundles_post_ra>
// kernel: tpu_custom_call.1
= control target key start
LH: loop header
LB: loop body
LE: loop exit
PB: predicated region body
PF: predicated region fallthrough
CT: control target
= control target key end

     0   :  { %9 = vsyncpa [#allocation3], 0  ;;  %s921_s0 = inlined_call_operand.vmem [shape: f32[2,16,8], index: 0, kind: input, shape index: {}]   ;;  %s922_s1 = inlined_call_operand.vmem [shape: f32[9,8], index: 1, kind: input, shape index: {}]   ;;  %s923_s2 = inlined_call_operand.vmem [shape: f32[9,8], index: 2, kind: input, shape index: {}]   ;;  %s924_s3 = inlined_call_operand.vmem [shape: f32[8,8], index: 3, kind: input, shape index: {}]   ;;  %s925_s4 = inlined_call_operand.hbm [shape: f32[2,8,8], index: 4, kind: output, shape index: {}]  }
   0x1   :  { %11 = vsyncpa [#allocation3 + $0x1], 0  ;;  %s720_s15 = smov 0   ;;  %s722_s16 = smov 0  }
   0x2   :  { %s724_s17 = smov 0   ;;  %s726_s18 = smov 0  }
   0x3 LB: > { %s741_s19 = sadd.s32 4294967295, %s690_s18   ;;  %s565_s20 = sadd.s32 4294967294, %s690_s18   ;;  %s690_s18 = sphi %s726_s18, %s931_s18   ;;  %s686_s17 = sphi %s724_s17, %s930_s17   ;;  %s682_s16 = sphi %s722_s16, %s929_s16   ;;  %s678_s15 = sphi %s720_s15, %s928_s15  }
   0x4   : > { %s745_s21 = sadd.s32 1, %s690_s18   ;;  %s113_s22 = sadd.s32 1, %s686_s17 }
   0x5   : > { %s110_s23 = ssub.s32 %s690_s18, %s745_s21  ;;  %p123_p0 = scmp.ne.s32.totalorder %s686_s17, %s682_s16 }
   0x6   : > { %p111_p1 = scmp.eq.s32.totalorder %s110_s23, 0  ;;  %p124_p2 = scmp.eq.s32.totalorder %s741_s19, 1 }
   0x7   : > { %p129_p3 = scmp.ne.s32.totalorder %s682_s16, %s678_s15  ;;  %p130_p4 = scmp.eq.s32.totalorder %s565_s20, 1 }
   0x8   : > { %s756_s24 = scalar_select %p111_p1, %s686_s17, %s113_s22  }
   0x9   : > { %p758_p5 = por %p124_p2, %p123_p0  ;;  %p762_p6 = por %p130_p4, %p129_p3 }
   0xa   : > { %p568_p7 = scmp.ge.s32.totalorder %s690_s18, 1  ;;  %p165_p8 = scmp.lt.s32.totalorder %s690_s18, 3 }
   0xc   : > { %p166_p9 = pnand %p568_p7, %p165_p8 }
   0xd   : > { %v415_v0 = vld [vmem:[%s924_s3] sm:$0xff] (!%p166_p9)  ;;  %p191_p10 = scmp.lt.s32.totalorder (!%p166_p9), %s741_s19, 1  ;;  %v202_v1 = vlaneseq (!%p166_p9)  ;;  %v692_v2 = vmov (!%p166_p9), 0.0   ;;  %vm693_vm0 = vmmov (!%p166_p9), 0   ;;  %vm222_vm1 = vcmask (!%p166_p9), 1046528   ;;  %s188_s22 = sand.u32 (!%p166_p9), 1, %s682_s16  }
   0xe   : > { %169 = sbr.rel (%p166_p9) target bundleno = 275 (0x113), region = 36  ;;  %582 = vmatprep.subr.mxu0 (!%p166_p9), %v692_v2  ;;  %584 = vmatprep.mubr.msk.f32.mxu0 (!%p166_p9), %vm693_vm0, %v692_v2  ;;  %v200_v4 = vld [vmem:[%s923_s2] sm:$0xff] (!%p166_p9)  ;;  %vm249_vm2 = vcmask (!%p166_p9), 1045504   ;;  %vm276_vm3 = vcmask (!%p166_p9), 1044480   ;;  %vm303_vm4 = vcmask (!%p166_p9), 1043456   ;;  %vm330_vm5 = vcmask (!%p166_p9), 1042432  }
   0xf   : > { %583 = vmatpush3.msra.mxu0 (!%p166_p9), %v415_v0  ;;  %v773_v3 = vshrl.u32 (!%p166_p9), %v202_v1, 7  ;;  %vm357_vm6 = vcmask (!%p166_p9), 1041408   ;;  %vm384_vm7 = vcmask (!%p166_p9), 1040384   ;;  %v573_v43 = vld [vmem:[%s923_s2 + $0x8] ss:$0 sm:$0xff] (!%p166_p9)  ;;  %v198_v52 = vld [vmem:[%s922_s1] sm:$0xff] (!%p166_p9) }
  0x10   : > { %vm416_vm8 = vcmask (!%p166_p9), 64512   ;;  %s569_s23 = sshll.u32 (!%p166_p9), %s188_s22, 3  ;;  %s576_s27 = sshll.u32 (!%p166_p9), %s741_s19, 7 }
  0x11   : > { %v204_v5 = vsub.s32 (!%p166_p9), 0, %v773_v3  ;;  %v216_v6 = vsub.s32 (!%p166_p9), 1, %v773_v3  ;;  %v243_v7 = vsub.s32 (!%p166_p9), 2, %v773_v3  ;;  %v270_v8 = vsub.s32 (!%p166_p9), 3, %v773_v3  ;;  %s190_s28 = scalar_lea.vmem (!%p166_p9), [#allocation2], %s569_s23  ;;  %s493_s7 = scalar_lea.sflag (!%p166_p9), [#allocation3], %s188_s22 }
  0x12   : > { %v297_v9 = vsub.s32 (!%p166_p9), 4, %v773_v3  ;;  %v324_v10 = vsub.s32 (!%p166_p9), 5, %v773_v3  ;;  %v351_v11 = vsub.s32 (!%p166_p9), 6, %v773_v3  ;;  %v378_v12 = vsub.s32 (!%p166_p9), 7, %v773_v3 }
  0x13   : > { %v211_v15 = vrot.slane (!%p166_p9), %v200_v4, %v204_v5  ;;  %v231_v16 = vrot.slane (!%p166_p9), %v200_v4, %v216_v6  ;;  %v258_v17 = vrot.slane (!%p166_p9), %v200_v4, %v243_v7  ;;  %v285_v18 = vrot.slane (!%p166_p9), %v200_v4, %v270_v8 }
  0x14   : > { %v312_v19 = vrot.slane (!%p166_p9), %v200_v4, %v297_v9  ;;  %v339_v20 = vrot.slane (!%p166_p9), %v200_v4, %v324_v10  ;;  %v366_v21 = vrot.slane (!%p166_p9), %v200_v4, %v351_v11  ;;  %v393_v22 = vrot.slane (!%p166_p9), %v200_v4, %v378_v12 }
  0x15   : > { %s192_s29 = scalar_select %p191_p10, %s741_s19, 1  ;;  %v205_v60 = vrot.slane %v198_v52, %v204_v5  ;;  %v217_v0 = vrot.slane %v198_v52, %v216_v6  ;;  %v244_v4 = vrot.slane %v198_v52, %v243_v7 }
  0x16   : > { %s694_s19 = smov [#allocation2]  }
  0x17   : > { %s579_s6 = sshll.u32 %s192_s29, 4  ;;  %s506_s29 = sshll.u32 %s190_s28, 4  ;;  %s880_s29 = int_to_ptr.vmem [resolvable:$true] %s506_s29 }
  0x18   : > { %s195_s9 = scalar_lea.vmem %s921_s0, %s579_s6  ;;  %s878_s6 = scalar_lea.hbm %s925_s4, %s576_s27 }
  0x19   : > { %v789_v13 = vld [vmem:[%s195_s9] sm:$0xff]  ;;  %v791_v14 = vld [vmem:[%s195_s9 + $0x8] sm:$0xff]  ;;  %s628_s8 = scalar_lea.vmem %s880_s29, 128  ;;  %s632_s9 = sshll.u32 %s694_s19, 4  ;;  %s633_s9 = int_to_ptr.vmem [resolvable:$false] %s632_s9 }
  0x1a   : > { %v212_v23 = vmul.f32 %v211_v15, %v789_v13  ;;  %v232_v24 = vmul.f32 %v231_v16, %v789_v13  ;;  %v233_v25 = vmul.f32 %v231_v16, %v791_v14  ;;  %v259_v26 = vmul.f32 %v258_v17, %v789_v13  ;;  %p629_p11 = scmp.ne.s32.totalorder %s880_s29, %s628_s8  ;;  %s634_s10 = scalar_lea.vmem %s633_s9, 256 }
  0x1b   : > { %v260_v27 = vmul.f32 %v258_v17, %v791_v14  ;;  %v286_v28 = vmul.f32 %v285_v18, %v789_v13  ;;  %v287_v29 = vmul.f32 %v285_v18, %v791_v14  ;;  %v313_v30 = vmul.f32 %v312_v19, %v789_v13  ;;  %p635_p0 = scmp.lt.s32.totalorder %s880_s29, %s633_s9  ;;  %p636_p1 = scmp.lt.s32.totalorder %s634_s10, %s628_s8 }
  0x1c   : > { %v236_v31 = vrot.slane %v232_v24, 1  ;;  %v237_v32 = vrot.slane %v233_v25, 1  ;;  %v263_v33 = vrot.slane %v259_v26, 2  ;;  %v314_v34 = vmul.f32 %v312_v19, %v791_v14  ;;  %p630_p12 = pnand %p629_p11, %p758_p5 }
  0x1d   : > { %v264_v35 = vrot.slane %v260_v27, 2  ;;  %v290_v36 = vrot.slane %v286_v28, 3  ;;  %v291_v37 = vrot.slane %v287_v29, 3  ;;  %v317_v38 = vrot.slane %v313_v30, 4  ;;  %p637_p2 = por %p636_p1, %p635_p0 }
  0x1e   : > { %v238_v39 = vsel %vm222_vm1, %v236_v31, %v237_v32  ;;  %v318_v40 = vrot.slane %v314_v34, 4  ;;  %v340_v41 = vmul.f32 %v339_v20, %v789_v13  ;;  %v341_v42 = vmul.f32 %v339_v20, %v791_v14  ;;  %p631_p13 = pneg %p630_p12 }
  0x1f   : > { %v240_v44 = vadd.f32 %v238_v39, %v212_v23  ;;  %v265_v45 = vsel %vm249_vm2, %v263_v33, %v264_v35  ;;  %v292_v46 = vsel %vm276_vm3, %v290_v36, %v291_v37  ;;  %v367_v47 = vmul.f32 %v366_v21, %v789_v13 }
  0x20   : > { %v319_v48 = vsel %vm303_vm4, %v317_v38, %v318_v40  ;;  %v344_v49 = vrot.slane %v340_v41, 5  ;;  %v345_v50 = vrot.slane %v341_v42, 5  ;;  %v368_v51 = vmul.f32 %v366_v21, %v791_v14  ;;  %p638_p3 = pnand %p637_p2, %p631_p13 }
  0x21   : > { %v267_v53 = vadd.f32 %v265_v45, %v240_v44  ;;  %v371_v54 = vrot.slane %v367_v47, 6  ;;  %v394_v55 = vmul.f32 %v393_v22, %v789_v13  ;;  %v395_v56 = vmul.f32 %v393_v22, %v791_v14 }
  0x22   : > { %v346_v57 = vsel %vm330_vm5, %v344_v49, %v345_v50  ;;  %v372_v58 = vrot.slane %v368_v51, 6  ;;  %v413_v59 = vmul.f32 %v573_v43, %v791_v14  ;;  %v206_v2 = vmul.f32 %v205_v60, %v789_v13 }
  0x23   : > { %v294_v61 = vadd.f32 %v292_v46, %v267_v53  ;;  %v398_v62 = vrot.slane %v394_v55, 7  ;;  %v399_v63 = vrot.slane %v395_v56, 7  ;;  %v271_v15 = vrot.slane %v198_v52, %v270_v8  ;;  %v572_v53 = vld [vmem:[%s922_s1 + $0x8] ss:$0 sm:$0xff] }
  0x24   : > { %v373_v1 = vsel %vm357_vm6, %v371_v54, %v372_v58  ;;  %v218_v5 = vmul.f32 %v217_v0, %v789_v13  ;;  %v219_v18 = vmul.f32 %v217_v0, %v791_v14  ;;  %v245_v6 = vmul.f32 %v244_v4, %v789_v13 }
  0x25   : > { %v321_v16 = vadd.f32 %v319_v48, %v294_v61  ;;  %v400_v17 = vsel %vm384_vm7, %v398_v62, %v399_v63  ;;  %v246_v19 = vmul.f32 %v244_v4, %v791_v14  ;;  %v272_v20 = vmul.f32 %v271_v15, %v789_v13 }
  0x26   : > { %v273_v21 = vmul.f32 %v271_v15, %v791_v14  ;;  %v223_v7 = vrot.slane %v218_v5, 1  ;;  %v224_v23 = vrot.slane %v219_v18, 1  ;;  %v298_v8 = vrot.slane %v198_v52, %v297_v9 }
  0x27   : > { %v348_v22 = vadd.f32 %v346_v57, %v321_v16  ;;  %v250_v24 = vrot.slane %v245_v6, 2  ;;  %v251_v25 = vrot.slane %v246_v19, 2  ;;  %v277_v26 = vrot.slane %v272_v20, 3 }
  0x28   : > { %v278_v27 = vrot.slane %v273_v21, 3  ;;  %v225_v29 = vsel %vm222_vm1, %v223_v7, %v224_v23  ;;  %v299_v30 = vmul.f32 %v298_v8, %v789_v13  ;;  %v300_v31 = vmul.f32 %v298_v8, %v791_v14 }
  0x29   : > { %v375_v28 = vadd.f32 %v373_v1, %v348_v22  ;;  %v227_v32 = vadd.f32 %v225_v29, %v206_v2  ;;  %v252_v33 = vsel %vm249_vm2, %v250_v24, %v251_v25  ;;  %v325_v35 = vrot.slane %v198_v52, %v324_v10 }
  0x2a   : > { %v279_v34 = vsel %vm276_vm3, %v277_v26, %v278_v27  ;;  %v304_v36 = vrot.slane %v299_v30, 4  ;;  %v305_v37 = vrot.slane %v300_v31, 4  ;;  %v352_v38 = vrot.slane %v198_v52, %v351_v11 }
  0x2b   : > { %v402_v9 = vadd.f32 %v400_v17, %v375_v28  ;;  %v254_v39 = vadd.f32 %v252_v33, %v227_v32  ;;  %v326_v40 = vmul.f32 %v325_v35, %v789_v13  ;;  %v327_v41 = vmul.f32 %v325_v35, %v791_v14 }
  0x2c   : > { %v379_v42 = vrot.slane %v198_v52, %v378_v12  ;;  %v306_v44 = vsel %vm303_vm4, %v304_v36, %v305_v37  ;;  %v353_v45 = vmul.f32 %v352_v38, %v789_v13  ;;  %v354_v10 = vmul.f32 %v352_v38, %v791_v14 }
  0x2d   : > { %v414_v43 = vadd.f32 %v413_v59, %v402_v9  ;;  %v281_v46 = vadd.f32 %v279_v34, %v254_v39  ;;  %v331_v47 = vrot.slane %v326_v40, 5  ;;  %v332_v48 = vrot.slane %v327_v41, 5 }
  0x2e   : > { %v380_v11 = vmul.f32 %v379_v42, %v789_v13  ;;  %v358_v49 = vrot.slane %v353_v45, 6  ;;  %v359_v50 = vrot.slane %v354_v10, 6  ;;  %v381_v3 = vmul.f32 %v379_v42, %v791_v14 }
  0x2f   : > { %585 = vmatmul.mubr.msk.f32.vlgmr.msra.gmra.mrb[0].mxu0 %vm416_vm8, %v414_v43  ;;  %v308_v12 = vadd.f32 %v306_v44, %v281_v46  ;;  %v333_v51 = vsel %vm330_vm5, %v331_v47, %v332_v48  ;;  %v407_v58 = vmul.f32 %v572_v53, %v791_v14 }
  0x30   : > { %v385_v52 = vrot.slane %v380_v11, 7  ;;  %v360_v54 = vsel %vm357_vm6, %v358_v49, %v359_v50  ;;  %v386_v55 = vrot.slane %v381_v3, 7 }
  0x31   : > { %v335_v13 = vadd.f32 %v333_v51, %v308_v12 }
  0x32   : > { %v387_v56 = vsel %vm384_vm7, %v385_v52, %v386_v55 }
  0x33   : > { %v362_v57 = vadd.f32 %v360_v54, %v335_v13 }
  0x35   : > { %v389_v59 = vadd.f32 %v387_v56, %v362_v57 }
  0x37   : > { %v408_v60 = vadd.f32 %v407_v58, %v389_v59 }
 0x102   : > { %v486_v61 = vpop.f32.mrb[0].mxu0 }
 0x103   : > { %v490_v62 = vadd.f32 %v486_v61, %v408_v60  ;;  %v586_v63 = vpop.f32.mrb[1].mxu0 }
 0x105   : > { %491 = vst.msk [vmem:[%s190_s28] sm:$0xff] %vm416_vm8, %v490_v62 }
 0x106   : > { %641 = shalt.err (!%p638_p3)
}
 0x107   : > { %s642_s11 = scalar_lea.hbm %s878_s6, 128  ;;  %s646_s14 = scalar_lea.hbm %s925_s4, 256 }
 0x108   : > { %p643_p4 = scmp.ne.s32.totalorder %s878_s6, %s642_s11  ;;  %p647_p9 = scmp.lt.u32.totalorder %s878_s6, %s925_s4 }
 0x109   : > { %p648_p10 = scmp.lt.u32.totalorder %s646_s14, %s642_s11  ;;  %p650_p12 = scmp.lt.u32.totalorder %s642_s11, %s878_s6 }
 0x10a   : > { %p644_p7 = pnand %p643_p4, %p758_p5 }
 0x10b   : > { %p649_p11 = por %p648_p10, %p647_p9 }
 0x10c   : > { %p645_p8 = pneg %p644_p7 }
 0x10d   : > { %p651_p13 = por %p650_p12, %p649_p11 }
 0x10f   : > { %p652_p0 = pnand %p651_p13, %p645_p8 }
 0x111   : > { %655 = shalt.err (!%p652_p0)
}
 0x112   : > { %587 = dma.vmem_to_hbm [thread:$0]  (%p758_p5), %s880_s29, 128, %s878_s6, %s493_s7  }
 0x113 PF: > { %p593_p1 = scmp.ge.s32.totalorder %s690_s18, 2  ;;  %s518_s23 = sand.u32 1, %s678_s15  }
 0x114   : > { %s519_s27 = scalar_lea.sflag [#allocation3], %s518_s23 }
 0x115   : > { %p590_p2 = pnand %p593_p1, %p762_p6 }
 0x117   : > { %673 = dma.done.wait (!%p590_p2), %s519_s27, 128  }
 0x118   : > { %675 = vsyncadd (!%p590_p2), %s519_s27, 4294967168  ;;  %p14_p3 = scmp.ge.s32.totalorder %s745_s21, 4   ;;  %s928_s15 = smov %s682_s16 }
 0x119   : > { %s929_s16 = smov %s686_s17  ;;  %s930_s17 = smov %s756_s24 }
 0x11a   : > { %s931_s18 = smov %s745_s21  ;;  %16 = sbr.rel (!%p14_p3) target bundleno = 3 (0x3), region = 71 }
 0x121   :  { %524 = vsyncpa [#allocation3], 1 }
 0x122   :  { %526 = vsyncpa [#allocation3 + $0x1], 1 }

</bundles_post_ra>
